<compile_context>
chip_gen: v5e
topology: v5e:2x2
jax: 0.10.0
libtpu: 0.0.40
codegen_flags: <defaults>
</compile_context>

<pallas_src>
import jax
import jax.numpy as jnp
from jax import lax
from jax.experimental import pallas as pl
from jax.experimental.pallas import tpu as pltpu

# Synthetic hyper-parameters (the torch script leaves TENSOR_INPUT_SIZE / NUM_UNITS
# to be defined elsewhere) -- small, deterministic choices.
TENSOR_INPUT_SIZE = 32
NUM_ACTIONS = 16          # NUM_ACTIONS = NUM_UNITS
HIDDEN = 100
NUM_GROUPS = 4            # independent batch groups (grid axis; weights stay resident)
BATCH_PER_GROUP = 8       # BN batch per independent forward call

PAD = 128                 # lane-dense padded feature width for every layer

_LEAKY_SLOPE = 0.01
_BN_EPS = 1e-5

# Row layout of the packed per-feature vector buffer ([16, PAD]).
_ROW_B1, _ROW_G1, _ROW_BT1 = 0, 1, 2
_ROW_B2, _ROW_G2, _ROW_BT2 = 3, 4, 5
_ROW_B3, _ROW_G3, _ROW_BT3 = 6, 7, 8
_ROW_B4 = 9
_N_VEC_ROWS = 16          # padded to a multiple of 8 sublanes


def dqn_kernel(x_ref, w_ref, v_ref, out_ref):
    """x_ref: [1, B, IN] f32, w_ref: [4, PAD, PAD] f32 (resident),
    v_ref: [16, PAD] f32 (resident), out_ref: [1, B, PAD] f32."""
    x = x_ref[0]            # [B, IN]  -- unpadded input, K=32 contraction
    v = v_ref[...]          # load the packed vector buffer once (2 f32 vregs)

    inv_b = jnp.float32(1.0 / x.shape[0])

    def leaky(h):
        # LeakyReLU(0.01): max(h, 0.01*h) is exact for slope in (0, 1).
        return jnp.maximum(h, _LEAKY_SLOPE * h)

    def bn(h, g_row, bt_row):
        # Training-mode BatchNorm1d, one-pass stats (biased variance), fused affine.
        mean = jnp.sum(h, axis=0, keepdims=True) * inv_b
        ex2 = jnp.sum(h * h, axis=0, keepdims=True) * inv_b
        var = ex2 - mean * mean
        scale = v[g_row:g_row + 1, :] * lax.rsqrt(var + _BN_EPS)   # EUP rsqrt
        return (h - mean) * scale + v[bt_row:bt_row + 1, :]

    def linear(h, w, b_row):
        return (jnp.dot(h, w, preferred_element_type=jnp.float32)
                + v[b_row:b_row + 1, :])

    # Layer 1: unpadded K=32 contraction against the first 32 (sublane-aligned) rows.
    h = bn(leaky(linear(x, w_ref[0, :TENSOR_INPUT_SIZE, :], _ROW_B1)), _ROW_G1, _ROW_BT1)
    h = bn(leaky(linear(h, w_ref[1], _ROW_B2)), _ROW_G2, _ROW_BT2)
    h = bn(leaky(linear(h, w_ref[2], _ROW_B3)), _ROW_G3, _ROW_BT3)
    out_ref[0] = linear(h, w_ref[3], _ROW_B4).astype(out_ref.dtype)


@jax.jit
def dqn_forward(x, w_all, v_all):
    """x: [G, B, TENSOR_INPUT_SIZE] f32 -> [G, B, NUM_ACTIONS] f32.

    Each of the G groups is an independent forward call of the module
    (independent BatchNorm statistics), processed as one grid step with the
    packed weights resident in VMEM across all steps."""
    g, b, _ = x.shape
    out_pad = pl.pallas_call(
        dqn_kernel,
        out_shape=jax.ShapeDtypeStruct((g, b, PAD), jnp.float32),
        grid=(g,),
        in_specs=[
            # x: one group per grid step (last two dims equal the array dims).
            pl.BlockSpec((1, b, TENSOR_INPUT_SIZE), lambda i: (i, 0, 0)),
            # Weights / vectors: constant block index -> DMA'd once, stay resident.
            pl.BlockSpec((4, PAD, PAD), lambda i: (0, 0, 0)),
            pl.BlockSpec((_N_VEC_ROWS, PAD), lambda i: (0, 0)),
        ],
        out_specs=pl.BlockSpec((1, b, PAD), lambda i: (i, 0, 0)),
        compiler_params=pltpu.CompilerParams(
            dimension_semantics=("parallel",),          # megacore / v7x second TC
            vmem_limit_bytes=8 * 1024 * 1024,
        ),
    )(x, w_all, v_all)
    # Padded output lanes are exactly zero; slice down to the logical action count.
    return out_pad[:, :, :NUM_ACTIONS]


def init_params(key):
    """Deterministic synthetic parameters with the module's logical (unpadded) shapes."""
    ks = jax.random.split(key, 12)

    def lin(kw, kb, fan_in, fan_out):
        scale = 1.0 / jnp.sqrt(jnp.float32(fan_in))
        # Stored as [in, out] (transposed w.r.t. torch's [out, in]) for x @ W.
        w = jax.random.uniform(kw, (fan_in, fan_out), jnp.float32, -scale, scale)
        b = jax.random.uniform(kb, (fan_out,), jnp.float32, -scale, scale)
        return w, b

    w1, b1 = lin(ks[0], ks[1], TENSOR_INPUT_SIZE, HIDDEN)
    w2, b2 = lin(ks[2], ks[3], HIDDEN, HIDDEN)
    w3, b3 = lin(ks[4], ks[5], HIDDEN, HIDDEN)
    w4, b4 = lin(ks[6], ks[7], HIDDEN, NUM_ACTIONS)

    def bn(kg, kb):
        g = 1.0 + 0.1 * jax.random.normal(kg, (HIDDEN,), jnp.float32)
        bt = 0.1 * jax.random.normal(kb, (HIDDEN,), jnp.float32)
        return g, bt

    g1, bt1 = bn(ks[8], ks[9])
    g2, bt2 = bn(ks[10], ks[11])
    g3, bt3 = bn(jax.random.fold_in(key, 101), jax.random.fold_in(key, 102))

    return dict(w1=w1, b1=b1, g1=g1, bt1=bt1,
                w2=w2, b2=b2, g2=g2, bt2=bt2,
                w3=w3, b3=b3, g3=g3, bt3=bt3,
                w4=w4, b4=b4)


def pack_params(p):
    """Zero-pad to 128 lanes and pack into two DMA-friendly buffers (2 param DMAs total).

    NOTE(v5e): storing w_all as bfloat16 (cast activations at the dot, keep f32
    accumulation/BN) halves the dominant HBM traffic but loosens the 1e-4 check
    to ~1e-2; kept f32 here for exactness."""
    w_all = jnp.zeros((4, PAD, PAD), jnp.float32)
    w_all = w_all.at[0, :TENSOR_INPUT_SIZE, :HIDDEN].set(p["w1"])
    w_all = w_all.at[1, :HIDDEN, :HIDDEN].set(p["w2"])
    w_all = w_all.at[2, :HIDDEN, :HIDDEN].set(p["w3"])
    w_all = w_all.at[3, :HIDDEN, :NUM_ACTIONS].set(p["w4"])

    v_all = jnp.zeros((_N_VEC_ROWS, PAD), jnp.float32)
    rows = [
        (_ROW_B1, p["b1"]), (_ROW_G1, p["g1"]), (_ROW_BT1, p["bt1"]),
        (_ROW_B2, p["b2"]), (_ROW_G2, p["g2"]), (_ROW_BT2, p["bt2"]),
        (_ROW_B3, p["b3"]), (_ROW_G3, p["g3"]), (_ROW_BT3, p["bt3"]),
        (_ROW_B4, p["b4"]),
    ]
    for row, vec in rows:
        v_all = v_all.at[row, :vec.shape[0]].set(vec)
    return w_all, v_all


def dqn_forward_ref(x, p):
    """Pure-jnp reference: each group is an independent forward call (own BN stats)."""
    def leaky(v):
        return jnp.where(v >= 0, v, _LEAKY_SLOPE * v)

    def bn(v, g, bt):
        mean = jnp.mean(v, axis=0, keepdims=True)
        var = jnp.mean((v - mean) ** 2, axis=0, keepdims=True)
        return (v - mean) / jnp.sqrt(var + _BN_EPS) * g + bt

    def one_group(xg):
        h = bn(leaky(xg @ p["w1"] + p["b1"]), p["g1"], p["bt1"])
        h = bn(leaky(h @ p["w2"] + p["b2"]), p["g2"], p["bt2"])
        h = bn(leaky(h @ p["w3"] + p["b3"]), p["g3"], p["bt3"])
        return h @ p["w4"] + p["b4"]

    return jax.vmap(one_group)(x)


if __name__ == "__main__":
    key = jax.random.PRNGKey(0)
    k_x, k_p = jax.random.split(key)

    # [num_groups, batch_per_group, features]: 4 independent small batches.
    x = jax.random.normal(
        k_x, (NUM_GROUPS, BATCH_PER_GROUP, TENSOR_INPUT_SIZE), jnp.float32)
    params = init_params(k_p)
    w_all, v_all = pack_params(params)

    out = dqn_forward(x, w_all, v_all)
    out = jax.block_until_ready(out)

    ref = dqn_forward_ref(x, params)
    assert out.shape == (NUM_GROUPS, BATCH_PER_GROUP, NUM_ACTIONS)
    assert jnp.allclose(out, ref, atol=1e-4, rtol=1e-4), "mismatch vs reference"

    print("KERNEL_OK")
</pallas_src>

<mosaic_0001>
module attributes {stable_mosaic.version = 11 : i64} {
  func.func @dqn_kernel(%arg0: i32, %arg1: memref<1x8x32xf32, #tpu.memory_space<vmem>>, %arg2: memref<4x128x128xf32, #tpu.memory_space<vmem>>, %arg3: memref<16x128xf32, #tpu.memory_space<vmem>>, %arg4: memref<1x8x128xf32, #tpu.memory_space<vmem>>) attributes {dimension_semantics = [#tpu.dimension_semantics<parallel>], iteration_bounds = array<i64: 4>, scalar_prefetch = 0 : i64, scratch_operands = 0 : i64, tpu.core_type = #tpu.core_type<tc>, window_params = [{transform_indices = @transform_0, window_bounds = array<i64: 1, 8, 32>}, {pipeline_mode = #tpu.pipeline_mode<synchronous>, transform_indices = @transform_1, window_bounds = array<i64: 4, 128, 128>}, {pipeline_mode = #tpu.pipeline_mode<synchronous>, transform_indices = @transform_2, window_bounds = array<i64: 16, 128>}, {transform_indices = @transform_3, window_bounds = array<i64: 1, 8, 128>}]} {
    %c0 = arith.constant 0 : index
    %c0_0 = arith.constant 0 : index
    %c0_1 = arith.constant 0 : index
    %0 = vector.load %arg1[%c0, %c0_0, %c0_1] : memref<1x8x32xf32, #tpu.memory_space<vmem>>, vector<1x8x32xf32>
    %1 = vector.shape_cast %0 : vector<1x8x32xf32> to vector<8x32xf32>
    %c0_2 = arith.constant 0 : index
    %c0_3 = arith.constant 0 : index
    %2 = vector.load %arg3[%c0_2, %c0_3] : memref<16x128xf32, #tpu.memory_space<vmem>>, vector<16x128xf32>
    %c0_4 = arith.constant 0 : index
    %c0_5 = arith.constant 0 : index
    %c0_6 = arith.constant 0 : index
    %3 = vector.load %arg2[%c0_4, %c0_5, %c0_6] : memref<4x128x128xf32, #tpu.memory_space<vmem>>, vector<1x32x128xf32>
    %4 = vector.shape_cast %3 : vector<1x32x128xf32> to vector<32x128xf32>
    %cst = arith.constant dense<0.000000e+00> : vector<8x128xf32>
    %5 = tpu.matmul %1, %4, %cst {dimension_numbers = #tpu.dot_dimension_numbers<[1], [0], [0], [1], [0, 0, 1, 1], [], []>} : vector<8x32xf32>, vector<32x128xf32>, vector<8x128xf32> -> vector<8x128xf32>
    %6 = vector.extract_strided_slice %2 {offsets = [0, 0], sizes = [1, 128], strides = [1, 1]} : vector<16x128xf32> to vector<1x128xf32>
    %7 = vector.broadcast %6 : vector<1x128xf32> to vector<8x128xf32>
    %8 = arith.addf %5, %7 : vector<8x128xf32>
    %cst_7 = arith.constant 0.00999999977 : f32
    %9 = vector.broadcast %cst_7 : f32 to vector<8x128xf32>
    %10 = arith.mulf %9, %8 : vector<8x128xf32>
    %11 = arith.maximumf %8, %10 : vector<8x128xf32>
    %cst_8 = arith.constant dense<0.000000e+00> : vector<128xf32>
    %12 = vector.multi_reduction <add>, %11, %cst_8 [0] : vector<8x128xf32> to vector<128xf32>
    %13 = vector.shape_cast %12 : vector<128xf32> to vector<1x128xf32>
    %cst_9 = arith.constant 1.250000e-01 : f32
    %14 = vector.broadcast %cst_9 : f32 to vector<1x128xf32>
    %15 = arith.mulf %13, %14 : vector<1x128xf32>
    %16 = arith.mulf %11, %11 : vector<8x128xf32>
    %cst_10 = arith.constant dense<0.000000e+00> : vector<128xf32>
    %17 = vector.multi_reduction <add>, %16, %cst_10 [0] : vector<8x128xf32> to vector<128xf32>
    %18 = vector.shape_cast %17 : vector<128xf32> to vector<1x128xf32>
    %cst_11 = arith.constant 1.250000e-01 : f32
    %19 = vector.broadcast %cst_11 : f32 to vector<1x128xf32>
    %20 = arith.mulf %18, %19 : vector<1x128xf32>
    %21 = arith.mulf %15, %15 : vector<1x128xf32>
    %22 = arith.subf %20, %21 : vector<1x128xf32>
    %23 = vector.extract_strided_slice %2 {offsets = [1, 0], sizes = [1, 128], strides = [1, 1]} : vector<16x128xf32> to vector<1x128xf32>
    %cst_12 = arith.constant 9.99999974E-6 : f32
    %24 = vector.broadcast %cst_12 : f32 to vector<1x128xf32>
    %25 = arith.addf %22, %24 : vector<1x128xf32>
    %26 = math.rsqrt %25 : vector<1x128xf32>
    %27 = arith.mulf %23, %26 : vector<1x128xf32>
    %28 = vector.broadcast %15 : vector<1x128xf32> to vector<8x128xf32>
    %29 = arith.subf %11, %28 : vector<8x128xf32>
    %30 = vector.broadcast %27 : vector<1x128xf32> to vector<8x128xf32>
    %31 = arith.mulf %29, %30 : vector<8x128xf32>
    %32 = vector.extract_strided_slice %2 {offsets = [2, 0], sizes = [1, 128], strides = [1, 1]} : vector<16x128xf32> to vector<1x128xf32>
    %33 = vector.broadcast %32 : vector<1x128xf32> to vector<8x128xf32>
    %34 = arith.addf %31, %33 : vector<8x128xf32>
    %c1 = arith.constant 1 : index
    %c0_13 = arith.constant 0 : index
    %c0_14 = arith.constant 0 : index
    %35 = vector.load %arg2[%c1, %c0_13, %c0_14] : memref<4x128x128xf32, #tpu.memory_space<vmem>>, vector<1x128x128xf32>
    %36 = vector.shape_cast %35 : vector<1x128x128xf32> to vector<128x128xf32>
    %cst_15 = arith.constant dense<0.000000e+00> : vector<8x128xf32>
    %37 = tpu.matmul %34, %36, %cst_15 {dimension_numbers = #tpu.dot_dimension_numbers<[1], [0], [0], [1], [0, 0, 1, 1], [], []>} : vector<8x128xf32>, vector<128x128xf32>, vector<8x128xf32> -> vector<8x128xf32>
    %38 = vector.extract_strided_slice %2 {offsets = [3, 0], sizes = [1, 128], strides = [1, 1]} : vector<16x128xf32> to vector<1x128xf32>
    %39 = vector.broadcast %38 : vector<1x128xf32> to vector<8x128xf32>
    %40 = arith.addf %37, %39 : vector<8x128xf32>
    %cst_16 = arith.constant 0.00999999977 : f32
    %41 = vector.broadcast %cst_16 : f32 to vector<8x128xf32>
    %42 = arith.mulf %41, %40 : vector<8x128xf32>
    %43 = arith.maximumf %40, %42 : vector<8x128xf32>
    %cst_17 = arith.constant dense<0.000000e+00> : vector<128xf32>
    %44 = vector.multi_reduction <add>, %43, %cst_17 [0] : vector<8x128xf32> to vector<128xf32>
    %45 = vector.shape_cast %44 : vector<128xf32> to vector<1x128xf32>
    %cst_18 = arith.constant 1.250000e-01 : f32
    %46 = vector.broadcast %cst_18 : f32 to vector<1x128xf32>
    %47 = arith.mulf %45, %46 : vector<1x128xf32>
    %48 = arith.mulf %43, %43 : vector<8x128xf32>
    %cst_19 = arith.constant dense<0.000000e+00> : vector<128xf32>
    %49 = vector.multi_reduction <add>, %48, %cst_19 [0] : vector<8x128xf32> to vector<128xf32>
    %50 = vector.shape_cast %49 : vector<128xf32> to vector<1x128xf32>
    %cst_20 = arith.constant 1.250000e-01 : f32
    %51 = vector.broadcast %cst_20 : f32 to vector<1x128xf32>
    %52 = arith.mulf %50, %51 : vector<1x128xf32>
    %53 = arith.mulf %47, %47 : vector<1x128xf32>
    %54 = arith.subf %52, %53 : vector<1x128xf32>
    %55 = vector.extract_strided_slice %2 {offsets = [4, 0], sizes = [1, 128], strides = [1, 1]} : vector<16x128xf32> to vector<1x128xf32>
    %cst_21 = arith.constant 9.99999974E-6 : f32
    %56 = vector.broadcast %cst_21 : f32 to vector<1x128xf32>
    %57 = arith.addf %54, %56 : vector<1x128xf32>
    %58 = math.rsqrt %57 : vector<1x128xf32>
    %59 = arith.mulf %55, %58 : vector<1x128xf32>
    %60 = vector.broadcast %47 : vector<1x128xf32> to vector<8x128xf32>
    %61 = arith.subf %43, %60 : vector<8x128xf32>
    %62 = vector.broadcast %59 : vector<1x128xf32> to vector<8x128xf32>
    %63 = arith.mulf %61, %62 : vector<8x128xf32>
    %64 = vector.extract_strided_slice %2 {offsets = [5, 0], sizes = [1, 128], strides = [1, 1]} : vector<16x128xf32> to vector<1x128xf32>
    %65 = vector.broadcast %64 : vector<1x128xf32> to vector<8x128xf32>
    %66 = arith.addf %63, %65 : vector<8x128xf32>
    %c2 = arith.constant 2 : index
    %c0_22 = arith.constant 0 : index
    %c0_23 = arith.constant 0 : index
    %67 = vector.load %arg2[%c2, %c0_22, %c0_23] : memref<4x128x128xf32, #tpu.memory_space<vmem>>, vector<1x128x128xf32>
    %68 = vector.shape_cast %67 : vector<1x128x128xf32> to vector<128x128xf32>
    %cst_24 = arith.constant dense<0.000000e+00> : vector<8x128xf32>
    %69 = tpu.matmul %66, %68, %cst_24 {dimension_numbers = #tpu.dot_dimension_numbers<[1], [0], [0], [1], [0, 0, 1, 1], [], []>} : vector<8x128xf32>, vector<128x128xf32>, vector<8x128xf32> -> vector<8x128xf32>
    %70 = vector.extract_strided_slice %2 {offsets = [6, 0], sizes = [1, 128], strides = [1, 1]} : vector<16x128xf32> to vector<1x128xf32>
    %71 = vector.broadcast %70 : vector<1x128xf32> to vector<8x128xf32>
    %72 = arith.addf %69, %71 : vector<8x128xf32>
    %cst_25 = arith.constant 0.00999999977 : f32
    %73 = vector.broadcast %cst_25 : f32 to vector<8x128xf32>
    %74 = arith.mulf %73, %72 : vector<8x128xf32>
    %75 = arith.maximumf %72, %74 : vector<8x128xf32>
    %cst_26 = arith.constant dense<0.000000e+00> : vector<128xf32>
    %76 = vector.multi_reduction <add>, %75, %cst_26 [0] : vector<8x128xf32> to vector<128xf32>
    %77 = vector.shape_cast %76 : vector<128xf32> to vector<1x128xf32>
    %cst_27 = arith.constant 1.250000e-01 : f32
    %78 = vector.broadcast %cst_27 : f32 to vector<1x128xf32>
    %79 = arith.mulf %77, %78 : vector<1x128xf32>
    %80 = arith.mulf %75, %75 : vector<8x128xf32>
    %cst_28 = arith.constant dense<0.000000e+00> : vector<128xf32>
    %81 = vector.multi_reduction <add>, %80, %cst_28 [0] : vector<8x128xf32> to vector<128xf32>
    %82 = vector.shape_cast %81 : vector<128xf32> to vector<1x128xf32>
    %cst_29 = arith.constant 1.250000e-01 : f32
    %83 = vector.broadcast %cst_29 : f32 to vector<1x128xf32>
    %84 = arith.mulf %82, %83 : vector<1x128xf32>
    %85 = arith.mulf %79, %79 : vector<1x128xf32>
    %86 = arith.subf %84, %85 : vector<1x128xf32>
    %87 = vector.extract_strided_slice %2 {offsets = [7, 0], sizes = [1, 128], strides = [1, 1]} : vector<16x128xf32> to vector<1x128xf32>
    %cst_30 = arith.constant 9.99999974E-6 : f32
    %88 = vector.broadcast %cst_30 : f32 to vector<1x128xf32>
    %89 = arith.addf %86, %88 : vector<1x128xf32>
    %90 = math.rsqrt %89 : vector<1x128xf32>
    %91 = arith.mulf %87, %90 : vector<1x128xf32>
    %92 = vector.broadcast %79 : vector<1x128xf32> to vector<8x128xf32>
    %93 = arith.subf %75, %92 : vector<8x128xf32>
    %94 = vector.broadcast %91 : vector<1x128xf32> to vector<8x128xf32>
    %95 = arith.mulf %93, %94 : vector<8x128xf32>
    %96 = vector.extract_strided_slice %2 {offsets = [8, 0], sizes = [1, 128], strides = [1, 1]} : vector<16x128xf32> to vector<1x128xf32>
    %97 = vector.broadcast %96 : vector<1x128xf32> to vector<8x128xf32>
    %98 = arith.addf %95, %97 : vector<8x128xf32>
    %c3 = arith.constant 3 : index
    %c0_31 = arith.constant 0 : index
    %c0_32 = arith.constant 0 : index
    %99 = vector.load %arg2[%c3, %c0_31, %c0_32] : memref<4x128x128xf32, #tpu.memory_space<vmem>>, vector<1x128x128xf32>
    %100 = vector.shape_cast %99 : vector<1x128x128xf32> to vector<128x128xf32>
    %cst_33 = arith.constant dense<0.000000e+00> : vector<8x128xf32>
    %101 = tpu.matmul %98, %100, %cst_33 {dimension_numbers = #tpu.dot_dimension_numbers<[1], [0], [0], [1], [0, 0, 1, 1], [], []>} : vector<8x128xf32>, vector<128x128xf32>, vector<8x128xf32> -> vector<8x128xf32>
    %102 = vector.extract_strided_slice %2 {offsets = [9, 0], sizes = [1, 128], strides = [1, 1]} : vector<16x128xf32> to vector<1x128xf32>
    %103 = vector.broadcast %102 : vector<1x128xf32> to vector<8x128xf32>
    %104 = arith.addf %101, %103 : vector<8x128xf32>
    %c0_34 = arith.constant 0 : index
    %c0_35 = arith.constant 0 : index
    %c0_36 = arith.constant 0 : index
    %105 = vector.load %arg4[%c0_34, %c0_35, %c0_36] : memref<1x8x128xf32, #tpu.memory_space<vmem>>, vector<1x8x128xf32>
    %106 = vector.shape_cast %105 : vector<1x8x128xf32> to vector<8x128xf32>
    %107 = vector.shape_cast %104 : vector<8x128xf32> to vector<1x8x128xf32>
    tpu.vector_store %arg4[%c0_34, %c0_35, %c0_36], %107 {strides = array<i32>} : memref<1x8x128xf32, #tpu.memory_space<vmem>>, vector<1x8x128xf32>,
    return
  }
  func.func @transform_0(%arg0: i32) -> (i32, i32, i32) {
    %c0_i32 = arith.constant 0 : i32
    %c0_i32_0 = arith.constant 0 : i32
    %c0_i32_1 = arith.constant 0 : i32
    return %arg0, %c0_i32, %c0_i32_0 : i32, i32, i32
  }
  func.func @transform_1(%arg0: i32) -> (i32, i32, i32) {
    %c0_i32 = arith.constant 0 : i32
    %c0_i32_0 = arith.constant 0 : i32
    %c0_i32_1 = arith.constant 0 : i32
    %c0_i32_2 = arith.constant 0 : i32
    return %c0_i32, %c0_i32_0, %c0_i32_1 : i32, i32, i32
  }
  func.func @transform_2(%arg0: i32) -> (i32, i32) {
    %c0_i32 = arith.constant 0 : i32
    %c0_i32_0 = arith.constant 0 : i32
    %c0_i32_1 = arith.constant 0 : i32
    return %c0_i32, %c0_i32_0 : i32, i32
  }
  func.func @transform_3(%arg0: i32) -> (i32, i32, i32) {
    %c0_i32 = arith.constant 0 : i32
    %c0_i32_0 = arith.constant 0 : i32
    %c0_i32_1 = arith.constant 0 : i32
    return %arg0, %c0_i32, %c0_i32_0 : i32, i32, i32
  }
}

</mosaic_0001>

<bundles_post_ra>
// kernel: dqn_forward.1
= control target key start
LH: loop header
LB: loop body
LE: loop exit
PB: predicated region body
PF: predicated region fallthrough
CT: control target
= control target key end

     0   :  { %8 = vsyncpa [#allocation3], 0  ;;  %s1016_s0 = inlined_call_operand.hbm [shape: f32[4,8,32], index: 0, kind: input, shape index: {}]   ;;  %s1017_s1 = inlined_call_operand.hbm [shape: f32[4,128,128], index: 1, kind: input, shape index: {}]   ;;  %s1018_s2 = inlined_call_operand.hbm [shape: f32[16,128], index: 2, kind: input, shape index: {}]   ;;  %s1019_s3 = inlined_call_operand.hbm [shape: f32[4,8,128], index: 3, kind: output, shape index: {}]  }
   0x1   :  { %10 = vsyncpa [#allocation3 + $0x1], 0 }
   0x2   :  { %11 = vsyncpa [#allocation6], 0 }
   0x3   :  { %12 = vsyncpa [#allocation4], 0 }
   0x4   :  { %14 = vsyncpa [#allocation4 + $0x1], 0  ;;  %s859_s12 = smov 0   ;;  %s861_s13 = smov 0  }
   0x5   :  { %s863_s14 = smov 0   ;;  %s865_s15 = smov 0  }
   0x6 LB: > { %s130_s18 = sshll.u32 %s1017_s1, 4  ;;  %s883_s19 = sadd.s32 4294967295, %s833_s15   ;;  %s833_s15 = sphi %s865_s15, %s1029_s15   ;;  %s829_s14 = sphi %s863_s14, %s1028_s14   ;;  %s825_s13 = sphi %s861_s13, %s1027_s13   ;;  %s821_s12 = sphi %s859_s12, %s1026_s12   ;;  %s131_s18 = int_to_ptr.hbm [resolvable:$true] %s130_s18 }
   0x7   : > { %p582_p0 = scmp.ge.s32.totalorder %s833_s15, 1  ;;  %p41_p1 = scmp.eq.s32.totalorder %s883_s19, 0 }
   0x8   : > { %p119_p2 = scmp.lt.s32.totalorder %s833_s15, 5  ;;  %s835_s21 = smov [#allocation5]  }
   0x9   : > { %s132_s22 = sshll.u32 %s835_s21, 4  ;;  %s144_s25 = sshll.u32 %s1018_s2, 4  ;;  %s133_s22 = int_to_ptr.vmem [resolvable:$true] %s132_s22  ;;  %s145_s25 = int_to_ptr.hbm [resolvable:$true] %s144_s25 }
   0xa   : > { %p888_p3 = pnand %p582_p0, %p119_p2  ;;  %s836_s26 = smov [#allocation7]  }
   0xb   : > { %s146_s27 = sshll.u32 %s836_s26, 4  ;;  %s837_s28 = smov 128   ;;  %s147_s27 = int_to_ptr.vmem [resolvable:$true] %s146_s27 }
   0xc   : > { %p610_p4 = pneg %p888_p3  ;;  %s838_s29 = smov 8  }
   0xd   : > { %s581_s30 = sadd.s32 4294967294, %s833_s15   ;;  %s901_s4 = sadd.s32 1, %s833_s15  }
   0xe   : > { %p611_p5 = pnand %p610_p4, %p41_p1  ;;  %s24_s5 = ssub.s32 %s833_s15, %s901_s4 }
   0xf   : > { %s27_s6 = sadd.s32 1, %s829_s14  ;;  %p25_p6 = scmp.eq.s32.totalorder %s24_s5, 0 }
  0x10   : > { %613 = dma.hbm_to_vmem [thread:$0]  (!%p611_p5), %s131_s18, 8192, %s133_s22, [#allocation6], %s837_s28, %s837_s28, %s838_s29  }
  0x11   : > { %616 = dma.hbm_to_vmem [thread:$0]  (!%p611_p5), %s145_s25, 256, %s147_s27, [#allocation6], %s837_s28, %s837_s28, %s838_s29  }
  0x12   : > { %p34_p7 = scmp.ne.s32.totalorder %s829_s14, %s825_s13  ;;  %p35_p8 = scmp.eq.s32.totalorder %s833_s15, 0 }
  0x13   : > { %p40_p9 = scmp.ne.s32.totalorder %s825_s13, %s821_s12  ;;  %p106_p12 = scmp.eq.s32.totalorder %s883_s19, 3 }
  0x14   : > { %s912_s7 = scalar_select %p25_p6, %s829_s14, %s27_s6  }
  0x15   : > { %p914_p10 = por %p35_p8, %p34_p7  ;;  %p920_p11 = por %p41_p1, %p40_p9 }
  0x16   : > { %p112_p13 = scmp.eq.s32.totalorder %s581_s30, 3  ;;  %p627_p0 = scmp.lt.s32.totalorder %s833_s15, 4 }
  0x17   : > { %s160_s10 = sand.u32 1, %s829_s14   ;;  %p927_p2 = por %p106_p12, %p34_p7 }
  0x18   : > { %p931_p4 = por %p112_p13, %p40_p9  ;;  %s586_s17 = sshll.u32 %s160_s10, 3 }
  0x19   : > { %s587_s18 = sshll.u32 %s833_s15, 3  ;;  %s164_s24 = scalar_lea.vmem [#allocation2], %s586_s17 }
  0x1a   : > { %s168_s23 = scalar_lea.hbm %s1016_s0, %s587_s18  ;;  %s172_s25 = sshll.u32 %s164_s24, 4  ;;  %s173_s25 = int_to_ptr.vmem [resolvable:$true] %s172_s25 }
  0x1b   : > { %s170_s26 = sshll.u32 %s168_s23, 4  ;;  %p941_p5 = pnand %p627_p0, %p914_p10  ;;  %s171_s26 = int_to_ptr.hbm [resolvable:$true] %s170_s26 }
  0x1c   : > { %s161_s28 = scalar_lea.sflag [#allocation3], %s160_s10  ;;  %s733_s29 = sshra.s32 %s171_s26, 4  ;;  %s734_s29 = int_to_ptr.hbm [resolvable:$true] %s733_s29 }
  0x1d   : > { %s735_s30 = scalar_lea.hbm %s734_s29, 8  ;;  %p737_p7 = pneg %p941_p5 }
  0x1e   : > { %p736_p6 = scmp.ne.s32.totalorder %s734_s29, %s735_s30  ;;  %s740_s17 = scalar_lea.hbm %s1016_s0, 32 }
  0x1f   : > { %p741_p10 = scmp.lt.s32.totalorder %s734_s29, %s1016_s0  ;;  %p742_p12 = scmp.lt.s32.totalorder %s740_s17, %s735_s30 }
  0x20   : > { %p738_p8 = pnand %p737_p7, %p736_p6 }
  0x21   : > { %p743_p13 = por %p742_p12, %p741_p10 }
  0x22   : > { %p739_p9 = pneg %p738_p8 }
  0x24   : > { %p744_p0 = pnand %p743_p13, %p739_p9 }
  0x26   : > { %747 = shalt.err (!%p744_p0)
}
  0x27   : > { %620 = dma.hbm_to_vmem [thread:$0]  (!%p941_p5), %s171_s26, 128, %s173_s25, %s161_s28  }
  0x28   : > { %181 = sbr.rel (%p888_p3) target bundleno = 733 (0x2dd), region = 32  ;;  %s958_s10 = sand.u32 (!%p888_p3), 1, %s825_s13  }
  0x29   : > { %s589_s21 = sshll.u32 (!%p888_p3), %s958_s10, 3  ;;  %s184_s22 = scalar_lea.sflag (!%p888_p3), [#allocation3], %s958_s10 }
  0x2a   : > { %s187_s23 = scalar_lea.vmem (!%p888_p3), [#allocation2], %s589_s21 }
  0x2d   : > { %808 = dma.done.wait (%p920_p11), %s184_s22, 128  }
  0x2e   : > { %810 = vsyncadd (%p920_p11), %s184_s22, 4294967168 }
  0x2f   : > { %812 = dma.done.wait (%p41_p1), [#allocation6], 8448  }
  0x30   : > { %814 = vsyncadd (%p41_p1), [#allocation6], 4294958848  ;;  %v227_v0 = vld [vmem:[#allocation5 + $0x18] sm:$0xff]  ;;  %v226_v1 = vld [vmem:[#allocation5 + $0x10] sm:$0xff]  ;;  %vm229_vm0 = vcmask 261120   ;;  %s595_s20 = sshll.u32 %s883_s19, 3 }
  0x31   : > { %245 = vmatpush.msra.mxu0 %v227_v0  ;;  %v225_v2 = vld [vmem:[#allocation5 + $0x8] sm:$0xff]  ;;  %v224_v3 = vld [vmem:[#allocation5] sm:$0xff]  ;;  %v221_v4 = vld [vmem:[%s187_s23] sm:$0xff]  ;;  %s487_s25 = scalar_lea.hbm %s1019_s3, %s595_s20  ;;  %s220_s26 = scalar_lea.vmem [#allocation8], %s589_s21 }
  0x32   : > { %v305_v5 = vld [vmem:[#allocation5 + $0xf8] sm:$0xff]  ;;  %v304_v6 = vld [vmem:[#allocation5 + $0xf0] sm:$0xff]  ;;  %v303_v7 = vld [vmem:[#allocation5 + $0xe8] sm:$0xff]  ;;  %s489_s27 = sshll.u32 %s220_s26, 4  ;;  %s491_s28 = sshll.u32 %s487_s25, 4  ;;  %s490_s27 = int_to_ptr.vmem [resolvable:$true] %s489_s27  ;;  %s492_s28 = int_to_ptr.hbm [resolvable:$true] %s491_s28 }
  0x33   : > { %246 = vmatpush.msra.mxu0 %v226_v1  ;;  %307 = vmatpush.msra.mxu1 %v305_v5  ;;  %v302_v8 = vld [vmem:[#allocation5 + $0xe0] sm:$0xff]  ;;  %v301_v9 = vld [vmem:[#allocation5 + $0xd8] sm:$0xff]  ;;  %v300_v10 = vld [vmem:[#allocation5 + $0xd0] sm:$0xff]  ;;  %s477_s29 = scalar_lea.sflag [#allocation4], %s958_s10  ;;  %s777_s30 = sshra.s32 %s492_s28, 4  ;;  %s778_s30 = int_to_ptr.hbm [resolvable:$true] %s777_s30 }
  0x34   : > { %v299_v11 = vld [vmem:[#allocation5 + $0xc8] sm:$0xff]  ;;  %v972_v12 = vld [vmem:[#allocation7] sm:$0xff]  ;;  %v297_v15 = vld [vmem:[#allocation5 + $0xb8] sm:$0xff]  ;;  %s779_s5 = scalar_lea.hbm %s778_s30, 8  ;;  %s783_s17 = scalar_lea.hbm %s1019_s3, 32 }
  0x35   : > { %247 = vmatpush.msra.mxu0 %v225_v2  ;;  %308 = vmatpush.msra.mxu1 %v304_v6  ;;  %v298_v13 = vld [vmem:[#allocation5 + $0xc0] sm:$0xff]  ;;  %v228_v14 = vperm.slane %v972_v12, 0  ;;  %v296_v16 = vld [vmem:[#allocation5 + $0xb0] sm:$0xff]  ;;  %v295_v19 = vld [vmem:[#allocation5 + $0xa8] sm:$0xff]  ;;  %v287_v55 = vperm.slane %v972_v12, 2  ;;  %v306_v2 = vperm.slane %v972_v12, 3  ;;  %p780_p1 = scmp.ne.s32.totalorder %s778_s30, %s779_s5  ;;  %p784_p5 = scmp.lt.s32.totalorder %s778_s30, %s1019_s3 }
  0x36   : > { %v294_v21 = vld [vmem:[#allocation5 + $0xa0] sm:$0xff]  ;;  %v293_v23 = vld [vmem:[#allocation5 + $0x98] sm:$0xff]  ;;  %v292_v26 = vld [vmem:[#allocation5 + $0x90] sm:$0xff]  ;;  %p785_p6 = scmp.lt.s32.totalorder %s783_s17, %s779_s5 }
  0x37   : > { %248 = vmatpush.msra.mxu0 %v224_v3  ;;  %309 = vmatpush.msra.mxu1 %v303_v7  ;;  %v291_v29 = vld [vmem:[#allocation5 + $0x88] sm:$0xff]  ;;  %v290_v31 = vld [vmem:[#allocation5 + $0x80] sm:$0xff]  ;;  %v379_v58 = vld [vmem:[#allocation5 + $0x178] sm:$0xff]  ;;  %p781_p3 = pnand %p780_p1, %p927_p2 }
  0x38   : > { %593 = vmatmul.msk.f32.vlgmr.msra.gmra.mxu0 %vm229_vm0, %v221_v4  ;;  %v378_v59 = vld [vmem:[#allocation5 + $0x170] sm:$0xff]  ;;  %381 = vmatpush.msra.mxu2 %v379_v58  ;;  %v377_v60 = vld [vmem:[#allocation5 + $0x168] sm:$0xff]  ;;  %v376_v61 = vld [vmem:[#allocation5 + $0x160] sm:$0xff]  ;;  %p786_p7 = por %p785_p6, %p784_p5 }
  0x39   : > { %310 = vmatpush.msra.mxu1 %v302_v8  ;;  %v375_v62 = vld [vmem:[#allocation5 + $0x158] sm:$0xff]  ;;  %v374_v63 = vld [vmem:[#allocation5 + $0x150] sm:$0xff]  ;;  %v373_v0 = vld [vmem:[#allocation5 + $0x148] sm:$0xff]  ;;  %p782_p11 = pneg %p781_p3 }
  0x3a   : > { %382 = vmatpush.msra.mxu2 %v378_v59  ;;  %v372_v1 = vld [vmem:[#allocation5 + $0x140] sm:$0xff]  ;;  %v371_v3 = vld [vmem:[#allocation5 + $0x138] sm:$0xff]  ;;  %v370_v4 = vld [vmem:[#allocation5 + $0x130] sm:$0xff] }
  0x3b   : > { %311 = vmatpush.msra.mxu1 %v301_v9  ;;  %v369_v7 = vld [vmem:[#allocation5 + $0x128] sm:$0xff]  ;;  %v368_v9 = vld [vmem:[#allocation5 + $0x120] sm:$0xff]  ;;  %p787_p8 = pnand %p786_p7, %p782_p11 }
  0x3c   : > { %383 = vmatpush.msra.mxu2 %v377_v60  ;;  %v443_v60 = vld [vmem:[#allocation5 + $0x1a8] sm:$0xff] }
  0x3d   : > { %312 = vmatpush.msra.mxu1 %v300_v10 }
  0x3e   : > { %384 = vmatpush.msra.mxu2 %v376_v61 }
  0x3f   : > { %313 = vmatpush.msra.mxu1 %v299_v11  ;;  %v367_v11 = vld [vmem:[#allocation5 + $0x118] sm:$0xff] }
  0x40   : > { %385 = vmatpush.msra.mxu2 %v375_v62  ;;  %v442_v62 = vld [vmem:[#allocation5 + $0x1a0] sm:$0xff] }
  0x41   : > { %314 = vmatpush.msra.mxu1 %v298_v13 }
  0x42   : > { %386 = vmatpush.msra.mxu2 %v374_v63 }
  0x43   : > { %315 = vmatpush.msra.mxu1 %v297_v15  ;;  %v366_v15 = vld [vmem:[#allocation5 + $0x110] sm:$0xff] }
  0x44   : > { %387 = vmatpush.msra.mxu2 %v373_v0  ;;  %v441_v0 = vld [vmem:[#allocation5 + $0x198] sm:$0xff] }
  0x45   : > { %316 = vmatpush.msra.mxu1 %v296_v16 }
  0x46   : > { %388 = vmatpush.msra.mxu2 %v372_v1 }
  0x47   : > { %317 = vmatpush.msra.mxu1 %v295_v19 }
  0x48   : > { %389 = vmatpush.msra.mxu2 %v371_v3  ;;  %v440_v3 = vld [vmem:[#allocation5 + $0x190] sm:$0xff] }
  0x49   : > { %318 = vmatpush.msra.mxu1 %v294_v21 }
  0x4a   : > { %390 = vmatpush.msra.mxu2 %v370_v4 }
  0x4b   : > { %319 = vmatpush.msra.mxu1 %v293_v23 }
  0x4c   : > { %391 = vmatpush.msra.mxu2 %v369_v7 }
  0x4d   : > { %320 = vmatpush.msra.mxu1 %v292_v26 }
  0x4e   : > { %392 = vmatpush.msra.mxu2 %v368_v9 }
  0x4f   : > { %321 = vmatpush.msra.mxu1 %v291_v29 }
  0x50   : > { %393 = vmatpush.msra.mxu2 %v367_v11 }
  0x51   : > { %322 = vmatpush.msra.mxu1 %v290_v31 }
  0x52   : > { %394 = vmatpush.msra.mxu2 %v366_v15 }
  0xb5   : > { %v250_v17 = vpop.f32.mrf.mxu0 }
  0xb6   : > { %v251_v18 = vadd.f32 %v250_v17, %v228_v14 }
  0xb8   : > { %v253_v20 = vmul.f32 0.01, %v251_v18 }
  0xba   : > { %v254_v22 = vmax.f32 %v251_v18, %v253_v20  ;;  %v365_v18 = vld [vmem:[#allocation5 + $0x108] sm:$0xff]  ;;  %v364_v20 = vld [vmem:[#allocation5 + $0x100] sm:$0xff] }
  0xbb   : > { %395 = vmatpush.msra.mxu2 %v365_v18 }
  0xbc   : > { %v255_v24 = vrot.slane %v254_v22, 4  ;;  %v262_v25 = vmul.f32 %v254_v22, %v254_v22 }
  0xbd   : > { %396 = vmatpush.msra.mxu2 %v364_v20 }
  0xbe   : > { %v256_v27 = vadd.f32 %v255_v24, %v254_v22  ;;  %v263_v28 = vrot.slane %v262_v25, 4 }
  0xc0   : > { %v264_v30 = vadd.f32 %v263_v28, %v262_v25  ;;  %v257_v32 = vrot.slane %v256_v27, 2 }
  0xc2   : > { %v265_v33 = vrot.slane %v264_v30, 2  ;;  %v258_v34 = vadd.f32 %v257_v32, %v256_v27 }
  0xc4   : > { %v266_v35 = vadd.f32 %v265_v33, %v264_v30  ;;  %v259_v36 = vrot.slane %v258_v34, 1 }
  0xc6   : > { %v260_v37 = vadd.f32 %v259_v36, %v258_v34  ;;  %v267_v38 = vrot.slane %v266_v35, 1 }
  0xc8   : > { %v261_v39 = vmul.f32 0.125, %v260_v37  ;;  %v268_v40 = vadd.f32 %v267_v38, %v266_v35 }
  0xca   : > { %v269_v41 = vmul.f32 0.125, %v268_v40  ;;  %v270_v42 = vmul.f32 %v261_v39, %v261_v39  ;;  %v284_v53 = vsub.f32 %v254_v22, %v261_v39 }
  0xcc   : > { %v271_v43 = vsub.f32 %v269_v41, %v270_v42 }
  0xce   : > { %v272_v44 = vadd.f32 1e-05, %v271_v43 }
  0xd0   : > { %667 = vrsqrt.f32 %v272_v44  ;;  %vm279_vm2 = vweird.f32 %v272_v44 }
  0xd6   : > { %v668_v45 = vpop.eup %667 }
  0xd7   : > { %v274_v46 = vmul.f32 %v668_v45, %v272_v44  ;;  %vm280_vm1 = vweird.f32 %v668_v45  ;;  %v361_v44 = vperm.slane %v972_v12, 5 }
  0xd8   : > { %vm281_vm3 = vmor %vm279_vm2, %vm280_vm1 }
  0xd9   : > { %v275_v47 = vmul.f32 %v668_v45, %v274_v46 }
  0xdb   : > { %v276_v48 = vmul.f32 0.5, %v275_v47  ;;  %v453_v47 = vld [vmem:[#allocation5 + $0x1f8] sm:$0xff] }
  0xdc   : > { %455 = vmatpush.msra.mxu3 %v453_v47 }
  0xdd   : > { %v277_v49 = vsub.f32 1.5, %v276_v48  ;;  %v452_v48 = vld [vmem:[#allocation5 + $0x1f0] sm:$0xff] }
  0xde   : > { %456 = vmatpush.msra.mxu3 %v452_v48 }
  0xdf   : > { %v278_v50 = vmul.f32 %v668_v45, %v277_v49  ;;  %v451_v49 = vld [vmem:[#allocation5 + $0x1e8] sm:$0xff] }
  0xe0   : > { %457 = vmatpush.msra.mxu3 %v451_v49 }
  0xe1   : > { %v282_v51 = vsel %vm281_vm3, %v668_v45, %v278_v50  ;;  %v450_v50 = vld [vmem:[#allocation5 + $0x1e0] sm:$0xff] }
  0xe2   : > { %v283_v52 = vmul.f32 %v282_v51, %v972_v12  ;;  %v449_v51 = vld [vmem:[#allocation5 + $0x1d8] sm:$0xff]  ;;  %458 = vmatpush.msra.mxu3 %v450_v50 }
  0xe4   : > { %v285_v54 = vperm.slane %v283_v52, 1  ;;  %v448_v52 = vld [vmem:[#allocation5 + $0x1d0] sm:$0xff]  ;;  %459 = vmatpush.msra.mxu3 %v449_v51 }
  0xe6   : > { %v286_v56 = vmul.f32 %v285_v54, %v284_v53  ;;  %v447_v53 = vld [vmem:[#allocation5 + $0x1c8] sm:$0xff]  ;;  %460 = vmatpush.msra.mxu3 %v448_v52  ;;  %v446_v54 = vld [vmem:[#allocation5 + $0x1c0] sm:$0xff] }
  0xe8   : > { %v288_v57 = vadd.f32 %v287_v55, %v286_v56  ;;  %461 = vmatpush.msra.mxu3 %v447_v53  ;;  %v380_v55 = vperm.slane %v972_v12, 6  ;;  %v445_v56 = vld [vmem:[#allocation5 + $0x1b8] sm:$0xff] }
  0xea   : > { %323 = vmatmul.f32.vlgmr.msra.gmra.mxu1 %v288_v57  ;;  %462 = vmatpush.msra.mxu3 %v446_v54  ;;  %v444_v57 = vld [vmem:[#allocation5 + $0x1b0] sm:$0xff] }
  0xec   : > { %463 = vmatpush.msra.mxu3 %v445_v56 }
  0xee   : > { %464 = vmatpush.msra.mxu3 %v444_v57 }
  0xf0   : > { %465 = vmatpush.msra.mxu3 %v443_v60 }
  0xf2   : > { %466 = vmatpush.msra.mxu3 %v442_v62 }
  0xf4   : > { %467 = vmatpush.msra.mxu3 %v441_v0 }
  0xf6   : > { %468 = vmatpush.msra.mxu3 %v440_v3 }
 0x167   : > { %v324_v5 = vpop.f32.mrf.mxu1 }
 0x168   : > { %v325_v6 = vadd.f32 %v324_v5, %v306_v2 }
 0x16a   : > { %v327_v8 = vmul.f32 0.01, %v325_v6 }
 0x16c   : > { %v328_v10 = vmax.f32 %v325_v6, %v327_v8  ;;  %v439_v6 = vld [vmem:[#allocation5 + $0x188] sm:$0xff]  ;;  %v438_v8 = vld [vmem:[#allocation5 + $0x180] sm:$0xff] }
 0x16d   : > { %469 = vmatpush.msra.mxu3 %v439_v6 }
 0x16e   : > { %v329_v13 = vrot.slane %v328_v10, 4  ;;  %v336_v14 = vmul.f32 %v328_v10, %v328_v10 }
 0x16f   : > { %470 = vmatpush.msra.mxu3 %v438_v8 }
 0x170   : > { %v330_v16 = vadd.f32 %v329_v13, %v328_v10  ;;  %v337_v17 = vrot.slane %v336_v14, 4 }
 0x172   : > { %v338_v19 = vadd.f32 %v337_v17, %v336_v14  ;;  %v331_v21 = vrot.slane %v330_v16, 2 }
 0x174   : > { %v339_v22 = vrot.slane %v338_v19, 2  ;;  %v332_v23 = vadd.f32 %v331_v21, %v330_v16 }
 0x176   : > { %v340_v24 = vadd.f32 %v339_v22, %v338_v19  ;;  %v333_v25 = vrot.slane %v332_v23, 1 }
 0x178   : > { %v334_v26 = vadd.f32 %v333_v25, %v332_v23  ;;  %v341_v27 = vrot.slane %v340_v24, 1 }
 0x17a   : > { %v335_v28 = vmul.f32 0.125, %v334_v26  ;;  %v342_v29 = vadd.f32 %v341_v27, %v340_v24 }
 0x17c   : > { %v343_v30 = vmul.f32 0.125, %v342_v29  ;;  %v344_v31 = vmul.f32 %v335_v28, %v335_v28  ;;  %v358_v42 = vsub.f32 %v328_v10, %v335_v28  ;;  %v223_v29 = vld [vmem:[#allocation7 + $0x8] sm:$0xff] }
 0x17e   : > { %v345_v32 = vsub.f32 %v343_v30, %v344_v31 }
 0x180   : > { %v346_v33 = vadd.f32 1e-05, %v345_v32 }
 0x182   : > { %669 = vrsqrt.f32 %v346_v33  ;;  %vm353_vm5 = vweird.f32 %v346_v33 }
 0x188   : > { %v670_v34 = vpop.eup %669 }
 0x189   : > { %v348_v35 = vmul.f32 %v670_v34, %v346_v33  ;;  %vm354_vm4 = vweird.f32 %v670_v34 }
 0x18a   : > { %vm355_vm6 = vmor %vm353_vm5, %vm354_vm4 }
 0x18b   : > { %v349_v36 = vmul.f32 %v670_v34, %v348_v35 }
 0x18d   : > { %v350_v37 = vmul.f32 0.5, %v349_v36 }
 0x18f   : > { %v351_v38 = vsub.f32 1.5, %v350_v37  ;;  %v454_v37 = vperm.slane %v223_v29, 1 }
 0x191   : > { %v352_v39 = vmul.f32 %v670_v34, %v351_v38 }
 0x193   : > { %v356_v40 = vsel %vm355_vm6, %v670_v34, %v352_v39  ;;  %v435_v34 = vperm.slane %v223_v29, 0 }
 0x194   : > { %v357_v41 = vmul.f32 %v356_v40, %v972_v12 }
 0x196   : > { %v359_v43 = vperm.slane %v357_v41, 4 }
 0x198   : > { %v360_v45 = vmul.f32 %v359_v43, %v358_v42 }
 0x19a   : > { %v362_v46 = vadd.f32 %v361_v44, %v360_v45 }
 0x19c   : > { %397 = vmatmul.f32.vlgmr.msra.gmra.mxu2 %v362_v46 }
 0x21f   : > { %v398_v58 = vpop.f32.mrf.mxu2 }
 0x220   : > { %v399_v59 = vadd.f32 %v398_v58, %v380_v55 }
 0x222   : > { %v401_v61 = vmul.f32 0.01, %v399_v59 }
 0x224   : > { %v402_v63 = vmax.f32 %v399_v59, %v401_v61 }
 0x226   : > { %v403_v1 = vrot.slane %v402_v63, 4  ;;  %v410_v2 = vmul.f32 %v402_v63, %v402_v63 }
 0x228   : > { %v404_v4 = vadd.f32 %v403_v1, %v402_v63  ;;  %v411_v5 = vrot.slane %v410_v2, 4 }
 0x22a   : > { %v412_v7 = vadd.f32 %v411_v5, %v410_v2  ;;  %v405_v9 = vrot.slane %v404_v4, 2 }
 0x22c   : > { %v413_v10 = vrot.slane %v412_v7, 2  ;;  %v406_v11 = vadd.f32 %v405_v9, %v404_v4 }
 0x22e   : > { %v414_v13 = vadd.f32 %v413_v10, %v412_v7  ;;  %v407_v14 = vrot.slane %v406_v11, 1 }
 0x230   : > { %v408_v15 = vadd.f32 %v407_v14, %v406_v11  ;;  %v415_v16 = vrot.slane %v414_v13, 1 }
 0x232   : > { %v409_v17 = vmul.f32 0.125, %v408_v15  ;;  %v416_v18 = vadd.f32 %v415_v16, %v414_v13 }
 0x234   : > { %v417_v19 = vmul.f32 0.125, %v416_v18  ;;  %v418_v20 = vmul.f32 %v409_v17, %v409_v17  ;;  %v432_v32 = vsub.f32 %v402_v63, %v409_v17 }
 0x236   : > { %v419_v21 = vsub.f32 %v417_v19, %v418_v20 }
 0x238   : > { %v420_v22 = vadd.f32 1e-05, %v419_v21 }
 0x23a   : > { %671 = vrsqrt.f32 %v420_v22  ;;  %vm427_vm8 = vweird.f32 %v420_v22 }
 0x240   : > { %v672_v23 = vpop.eup %671 }
 0x241   : > { %v422_v24 = vmul.f32 %v672_v23, %v420_v22  ;;  %vm428_vm7 = vweird.f32 %v672_v23 }
 0x242   : > { %vm429_vm9 = vmor %vm427_vm8, %vm428_vm7 }
 0x243   : > { %v423_v25 = vmul.f32 %v672_v23, %v422_v24 }
 0x245   : > { %v424_v26 = vmul.f32 0.5, %v423_v25 }
 0x247   : > { %v425_v27 = vsub.f32 1.5, %v424_v26 }
 0x249   : > { %v426_v28 = vmul.f32 %v672_v23, %v425_v27 }
 0x24b   : > { %v430_v30 = vsel %vm429_vm9, %v672_v23, %v426_v28 }
 0x24c   : > { %v431_v31 = vmul.f32 %v430_v30, %v972_v12 }
 0x24e   : > { %v433_v33 = vperm.slane %v431_v31, 7 }
 0x250   : > { %v434_v35 = vmul.f32 %v433_v33, %v432_v32 }
 0x252   : > { %v436_v36 = vadd.f32 %v435_v34, %v434_v35 }
 0x254   : > { %471 = vmatmul.f32.vlgmr.msra.gmra.mxu3 %v436_v36 }
 0x2d7   : > { %v472_v38 = vpop.f32.mrf.mxu3 }
 0x2d8   : > { %v473_v12 = vadd.f32 %v472_v38, %v454_v37 }
 0x2da   : > { %475 = vst [vmem:[%s220_s26] sm:$0xff] %v473_v12 }
 0x2db   : > { %790 = shalt.err (!%p787_p8)
}
 0x2dc   : > { %608 = dma.vmem_to_hbm [thread:$0]  (%p927_p2), %s490_s27, 128, %s492_s28, %s477_s29  }
 0x2dd PF: > { %p630_p9 = scmp.ge.s32.totalorder %s833_s15, 2  ;;  %s503_s10 = sand.u32 1, %s821_s12  }
 0x2de   : > { %s504_s21 = scalar_lea.sflag [#allocation4], %s503_s10 }
 0x2df   : > { %p622_p10 = pnand %p630_p9, %p931_p4 }
 0x2e1   : > { %p623_p12 = pneg %p622_p10 }
 0x2e3   : > { %816 = dma.done.wait (%p623_p12), %s504_s21, 128  }
 0x2e4   : > { %818 = vsyncadd (%p623_p12), %s504_s21, 4294967168  ;;  %p17_p13 = scmp.ge.s32.totalorder %s901_s4, 6   ;;  %s1026_s12 = smov %s825_s13 }
 0x2e5   : > { %s1027_s13 = smov %s829_s14  ;;  %s1028_s14 = smov %s912_s7 }
 0x2e6   : > { %s1029_s15 = smov %s901_s4  ;;  %19 = sbr.rel (!%p17_p13) target bundleno = 6 (0x6), region = 88 }
 0x2eb   :  { %510 = vsyncpa [#allocation3], 1 }
 0x2ec   :  { %512 = vsyncpa [#allocation3 + $0x1], 1 }
 0x2ed   :  { %513 = vsyncpa [#allocation6], 1 }
 0x2ee   :  { %514 = vsyncpa [#allocation4], 1 }
 0x2ef   :  { %516 = vsyncpa [#allocation4 + $0x1], 1 }

</bundles_post_ra>
